<compile_context>
chip_gen: v7x
topology: tpu7x:2x2x1
jax: 0.10.0
libtpu: 0.0.40
codegen_flags: <defaults>
</compile_context>

<pallas_src>
import math
import functools

import jax
import jax.numpy as jnp
from jax.experimental import pallas as pl
from jax.experimental.pallas import tpu as pltpu


# ----------------------------- helpers ---------------------------------------


def _round_up(v, m):
    return ((v + m - 1) // m) * m


def _pick_weight_tiles(n_in, n_out):
    # MXU/lane-aligned tiles, small enough to double-buffer comfortably within
    # the default scoped VMEM on v5e/v6e/v7x even for large layers.
    tk = min(_round_up(n_in, 128), 512)
    tn = min(_round_up(n_out, 128), 256)
    return tk, tn


_MATMUL_PARAMS = pltpu.CompilerParams(
    dimension_semantics=("parallel", "parallel", "arbitrary"),
    vmem_limit_bytes=32 * 1024 * 1024,
)

_ELTWISE_PARAMS = pltpu.CompilerParams(
    dimension_semantics=("parallel", "parallel"),
    vmem_limit_bytes=32 * 1024 * 1024,
)


# ----------------------------- kernels ----------------------------------------


def _linear_kernel(x_ref, wt_ref, bias_ref, o_ref, acc_ref, *, extra_add):
    """out = x @ w_t + bias (+ extra_add). Used for MAP and cached-sample eval."""
    k = pl.program_id(2)

    @pl.when(k == 0)
    def _():
        acc_ref[...] = jnp.zeros_like(acc_ref)

    acc_ref[...] += jnp.dot(x_ref[...], wt_ref[...],
                            preferred_element_type=jnp.float32)

    @pl.when(k == pl.num_programs(2) - 1)
    def _():
        out = acc_ref[...] + bias_ref[...].astype(jnp.float32)
        if extra_add:
            out = out + extra_add
        o_ref[...] = out.astype(o_ref.dtype)


def _train_kernel(x_ref, mu_wt_ref, sig_ref, bias_ref, noise_ref,
                  o_ref, mu_acc, var_acc, *, fused_exp):
    """Local reparameterization trick; mean and variance matmuls share the x tile.

    If fused_exp: sig_ref holds clamped log-variances and exp is computed per
    tile. Otherwise sig_ref already holds s2 = exp(clip(logsig2)) (precomputed
    once per forward when the batch spans several row tiles).
    """
    k = pl.program_id(2)

    @pl.when(k == 0)
    def _():
        mu_acc[...] = jnp.zeros_like(mu_acc)
        var_acc[...] = jnp.zeros_like(var_acc)

    x = x_ref[...]
    mu_acc[...] += jnp.dot(x, mu_wt_ref[...], preferred_element_type=jnp.float32)

    if fused_exp:
        logsig2 = jnp.clip(sig_ref[...].astype(jnp.float32), -11.0, 11.0)
        s2 = jnp.exp(logsig2).astype(x.dtype)
    else:
        s2 = sig_ref[...].astype(x.dtype)
    var_acc[...] += jnp.dot(x * x, s2, preferred_element_type=jnp.float32)

    @pl.when(k == pl.num_programs(2) - 1)
    def _():
        mu_out = mu_acc[...] + bias_ref[...].astype(jnp.float32)
        var_out = var_acc[...] + 1e-8
        out = mu_out + jnp.sqrt(var_out) * noise_ref[...].astype(jnp.float32)
        o_ref[...] = out.astype(o_ref.dtype)


def _exp_clip_kernel(logsig2_t_ref, s2_ref):
    """s2_t = exp(clip(logsig2_t, -11, 11))."""
    logsig2 = jnp.clip(logsig2_t_ref[...].astype(jnp.float32), -11.0, 11.0)
    s2_ref[...] = jnp.exp(logsig2).astype(s2_ref.dtype)


def _sample_weight_kernel(mu_wt_ref, logsig2_t_ref, rand_t_ref, w_ref):
    """w_t = mu_w_t + exp(0.5*clip(logsig2_t)) * rand_t (exp(0.5*) == sqrt(exp))."""
    logsig2 = jnp.clip(logsig2_t_ref[...].astype(jnp.float32), -11.0, 11.0)
    sig = jnp.exp(0.5 * logsig2)
    w = mu_wt_ref[...].astype(jnp.float32) + sig * rand_t_ref[...].astype(jnp.float32)
    w_ref[...] = w.astype(w_ref.dtype)


# ----------------------------- cached pallas_call builders ---------------------


@functools.lru_cache(maxsize=None)
def _build_linear(Bp, Kp, Np, tm, tk, tn, extra_add, out_dtype_name):
    kernel = functools.partial(_linear_kernel, extra_add=extra_add)
    return pl.pallas_call(
        kernel,
        out_shape=jax.ShapeDtypeStruct((Bp, Np), jnp.dtype(out_dtype_name)),
        grid_spec=pltpu.PrefetchScalarGridSpec(
            num_scalar_prefetch=0,
            grid=(Bp // tm, Np // tn, Kp // tk),
            in_specs=[
                pl.BlockSpec((tm, tk), lambda i, j, k: (i, k)),
                pl.BlockSpec((tk, tn), lambda i, j, k: (k, j)),
                pl.BlockSpec((1, tn), lambda i, j, k: (0, j)),
            ],
            out_specs=pl.BlockSpec((tm, tn), lambda i, j, k: (i, j)),
            scratch_shapes=[pltpu.VMEM((tm, tn), jnp.float32)],
        ),
        compiler_params=_MATMUL_PARAMS,
    )


@functools.lru_cache(maxsize=None)
def _build_train(Bp, Kp, Np, tm, tk, tn, fused_exp, out_dtype_name):
    kernel = functools.partial(_train_kernel, fused_exp=fused_exp)
    return pl.pallas_call(
        kernel,
        out_shape=jax.ShapeDtypeStruct((Bp, Np), jnp.dtype(out_dtype_name)),
        grid_spec=pltpu.PrefetchScalarGridSpec(
            num_scalar_prefetch=0,
            grid=(Bp // tm, Np // tn, Kp // tk),
            in_specs=[
                pl.BlockSpec((tm, tk), lambda i, j, k: (i, k)),
                pl.BlockSpec((tk, tn), lambda i, j, k: (k, j)),
                pl.BlockSpec((tk, tn), lambda i, j, k: (k, j)),
                pl.BlockSpec((1, tn), lambda i, j, k: (0, j)),
                pl.BlockSpec((tm, tn), lambda i, j, k: (i, j)),
            ],
            out_specs=pl.BlockSpec((tm, tn), lambda i, j, k: (i, j)),
            scratch_shapes=[pltpu.VMEM((tm, tn), jnp.float32),
                            pltpu.VMEM((tm, tn), jnp.float32)],
        ),
        compiler_params=_MATMUL_PARAMS,
    )


@functools.lru_cache(maxsize=None)
def _build_exp_clip(Kp, Np, tk, tn, out_dtype_name):
    return pl.pallas_call(
        _exp_clip_kernel,
        out_shape=jax.ShapeDtypeStruct((Kp, Np), jnp.dtype(out_dtype_name)),
        grid_spec=pltpu.PrefetchScalarGridSpec(
            num_scalar_prefetch=0,
            grid=(Kp // tk, Np // tn),
            in_specs=[pl.BlockSpec((tk, tn), lambda a, b: (a, b))],
            out_specs=pl.BlockSpec((tk, tn), lambda a, b: (a, b)),
        ),
        compiler_params=_ELTWISE_PARAMS,
    )


@functools.lru_cache(maxsize=None)
def _build_sample_weight(Kp, Np, tk, tn, out_dtype_name):
    return pl.pallas_call(
        _sample_weight_kernel,
        out_shape=jax.ShapeDtypeStruct((Kp, Np), jnp.dtype(out_dtype_name)),
        grid_spec=pltpu.PrefetchScalarGridSpec(
            num_scalar_prefetch=0,
            grid=(Kp // tk, Np // tn),
            in_specs=[
                pl.BlockSpec((tk, tn), lambda a, b: (a, b)),
                pl.BlockSpec((tk, tn), lambda a, b: (a, b)),
                pl.BlockSpec((tk, tn), lambda a, b: (a, b)),
            ],
            out_specs=pl.BlockSpec((tk, tn), lambda a, b: (a, b)),
        ),
        compiler_params=_ELTWISE_PARAMS,
    )


# ----------------------------- layer wrapper -----------------------------------


class VBLinearPallas:
    """JAX/Pallas port of the PyTorch VBLinear layer (forward pass)."""

    def __init__(self, in_features, out_features, prior_prec=1.0,
                 enable_map=False, std_init=-9.0, key=None, dtype=jnp.float32):
        self.n_in = in_features
        self.n_out = out_features
        self.map = enable_map
        self.prior_prec = prior_prec
        self.std_init = std_init
        self.random = None            # (n_out, n_in), torch layout
        self._w_samp_t_pad = None     # cached padded, transposed sampled weight

        if key is None:
            key = jax.random.PRNGKey(0)
        k_mu, k_ls = jax.random.split(key)
        stdv = 1.0 / math.sqrt(in_features)
        # reset_parameters(): mu_w ~ N(0, stdv), logsig2_w ~ N(std_init, 0.001), bias = 0
        # Stored pre-transposed as (n_in, n_out): K-major feed to the MXU.
        self.mu_w_t = stdv * jax.random.normal(
            k_mu, (in_features, out_features), dtype)
        self.logsig2_w_t = std_init + 0.001 * jax.random.normal(
            k_ls, (in_features, out_features), dtype)
        self.bias = jnp.zeros((out_features,), dtype)

        # Tile sizes and padded parameter copies (padded once, reused per call).
        self._tk, self._tn = _pick_weight_tiles(in_features, out_features)
        self._Kp = _round_up(in_features, self._tk)
        self._Np = _round_up(out_features, self._tn)
        pad_kn = ((0, self._Kp - in_features), (0, self._Np - out_features))
        self._mu_w_t_pad = jnp.pad(self.mu_w_t, pad_kn)
        self._logsig2_t_pad = jnp.pad(self.logsig2_w_t, pad_kn)
        self._bias_pad = jnp.pad(
            self.bias, (0, self._Np - out_features)).reshape(1, self._Np)
        self._param_dt = jnp.dtype(dtype).name

    # --- torch-API parity helpers ---
    def reset_random(self):
        self.random = None
        self._w_samp_t_pad = None

    def _pad_x(self, x, Bp):
        B = x.shape[0]
        return jnp.pad(x, ((0, Bp - B), (0, self._Kp - self.n_in)))

    def forward(self, x, *, training=True, key=None):
        B = x.shape[0]
        tm = min(_round_up(B, 8), 128)
        Bp = _round_up(B, tm)
        x_pad = self._pad_x(x, Bp)
        out_dt = jnp.dtype(x.dtype).name

        if training:
            if key is None:
                key = jax.random.PRNGKey(1)
            noise = jax.random.normal(key, (B, self.n_out), x.dtype)
            noise_pad = jnp.pad(
                noise, ((0, Bp - B), (0, self._Np - self.n_out)))

            fused_exp = (Bp // tm) == 1
            if fused_exp:
                # Single row tile: compute exp(clip(.)) inside the matmul kernel
                # (no extra HBM pass over the weights).
                sig_arg = self._logsig2_t_pad
            else:
                # Many row tiles: hoist exp(clip(.)) to one elementwise pass so
                # EUP work does not scale with the number of batch tiles.
                exp_fn = _build_exp_clip(self._Kp, self._Np, self._tk, self._tn,
                                         self._param_dt)
                sig_arg = exp_fn(self._logsig2_t_pad)

            train_fn = _build_train(Bp, self._Kp, self._Np, tm, self._tk,
                                    self._tn, fused_exp, out_dt)
            out = train_fn(x_pad, self._mu_w_t_pad, sig_arg,
                           self._bias_pad, noise_pad)
            return out[:B, :self.n_out]

        if self.map:
            # Dedicated plain linear kernel: no logsig2 read, no EUP work.
            lin_fn = _build_linear(Bp, self._Kp, self._Np, tm, self._tk,
                                   self._tn, 0.0, out_dt)
            out = lin_fn(x_pad, self._mu_w_t_pad, self._bias_pad)
            return out[:B, :self.n_out]

        # Non-MAP eval: sample (or reuse) the weight once, then plain linear.
        if self._w_samp_t_pad is None:
            if self.random is None:
                if key is None:
                    key = jax.random.PRNGKey(2)
                self.random = jax.random.normal(
                    key, (self.n_out, self.n_in), self.mu_w_t.dtype)
            rand_t_pad = jnp.pad(
                self.random.T,
                ((0, self._Kp - self.n_in), (0, self._Np - self.n_out)))
            samp_fn = _build_sample_weight(self._Kp, self._Np, self._tk,
                                           self._tn, self._param_dt)
            self._w_samp_t_pad = samp_fn(self._mu_w_t_pad,
                                         self._logsig2_t_pad, rand_t_pad)

        lin_fn = _build_linear(Bp, self._Kp, self._Np, tm, self._tk,
                               self._tn, 1e-8, out_dt)
        out = lin_fn(x_pad, self._w_samp_t_pad, self._bias_pad)
        return out[:B, :self.n_out]

    # TODO(synk): kl() / sample_random_state() / import_random_state() are plain
    # parameter-space utilities (no kernel needed) and are left to JAX glue.


# ----------------------------- main ---------------------------------------------


if __name__ == "__main__":
    B, N_IN, N_OUT = 8, 32, 64

    key = jax.random.PRNGKey(0)
    k_layer, k_x, k_noise, k_rand, k_xbig, k_noise_big = jax.random.split(key, 6)

    layer = VBLinearPallas(N_IN, N_OUT, key=k_layer)
    x = jax.random.normal(k_x, (B, N_IN), jnp.float32)

    # Training-mode forward (local reparameterization trick, fused exp path).
    out_train = jax.block_until_ready(layer.forward(x, training=True, key=k_noise))

    # Eval-mode, MAP forward.
    layer.map = True
    out_map = jax.block_until_ready(layer.forward(x, training=False))
    layer.map = False

    # Eval-mode, sampled-weight forward.
    out_eval = jax.block_until_ready(layer.forward(x, training=False, key=k_rand))

    # Training-mode forward with many row tiles (hoisted exp path).
    B_BIG = 256
    x_big = jax.random.normal(k_xbig, (B_BIG, N_IN), jnp.float32)
    out_train_big = jax.block_until_ready(
        layer.forward(x_big, training=True, key=k_noise_big))

    # ---------------- reference check against plain JAX ----------------
    logsig2 = jnp.clip(layer.logsig2_w_t, -11.0, 11.0)
    s2_w_t = jnp.exp(logsig2)

    noise = jax.random.normal(k_noise, (B, N_OUT), jnp.float32)
    mu_ref = x @ layer.mu_w_t + layer.bias
    var_ref = (x ** 2) @ s2_w_t + 1e-8
    ref_train = mu_ref + jnp.sqrt(var_ref) * noise

    ref_map = x @ layer.mu_w_t + layer.bias

    w_eval_t = layer.mu_w_t + jnp.sqrt(s2_w_t) * layer.random.T
    ref_eval = x @ w_eval_t + layer.bias + 1e-8

    noise_big = jax.random.normal(k_noise_big, (B_BIG, N_OUT), jnp.float32)
    mu_ref_big = x_big @ layer.mu_w_t + layer.bias
    var_ref_big = (x_big ** 2) @ s2_w_t + 1e-8
    ref_train_big = mu_ref_big + jnp.sqrt(var_ref_big) * noise_big

    assert out_train.shape == (B, N_OUT)
    assert out_map.shape == (B, N_OUT)
    assert out_eval.shape == (B, N_OUT)
    assert out_train_big.shape == (B_BIG, N_OUT)
    assert jnp.allclose(out_train, ref_train, atol=1e-5, rtol=1e-5)
    assert jnp.allclose(out_map, ref_map, atol=1e-5, rtol=1e-5)
    assert jnp.allclose(out_eval, ref_eval, atol=1e-5, rtol=1e-5)
    assert jnp.allclose(out_train_big, ref_train_big, atol=1e-4, rtol=1e-4)

    print("KERNEL_OK")
</pallas_src>

<mosaic_0001>
module attributes {stable_mosaic.version = 11 : i64} {
  func.func @_train_kernel(%arg0: i32, %arg1: i32, %arg2: i32, %arg3: memref<8x128xf32, #tpu.memory_space<vmem>>, %arg4: memref<128x128xf32, #tpu.memory_space<vmem>>, %arg5: memref<128x128xf32, #tpu.memory_space<vmem>>, %arg6: memref<1x128xf32, #tpu.memory_space<vmem>>, %arg7: memref<8x128xf32, #tpu.memory_space<vmem>>, %arg8: memref<8x128xf32, #tpu.memory_space<vmem>>, %arg9: memref<8x128xf32, #tpu.memory_space<vmem>>, %arg10: memref<8x128xf32, #tpu.memory_space<vmem>>) attributes {dimension_semantics = [#tpu.dimension_semantics<parallel>, #tpu.dimension_semantics<parallel>, #tpu.dimension_semantics<arbitrary>], iteration_bounds = array<i64: 1, 1, 1>, scalar_prefetch = 0 : i64, scratch_operands = 2 : i64, tpu.core_type = #tpu.core_type<tc>, window_params = [{transform_indices = @transform_0, window_bounds = array<i64: 8, 128>}, {transform_indices = @transform_1, window_bounds = array<i64: 128, 128>}, {transform_indices = @transform_2, window_bounds = array<i64: 128, 128>}, {transform_indices = @transform_3, window_bounds = array<i64: 1, 128>}, {transform_indices = @transform_4, window_bounds = array<i64: 8, 128>}, {transform_indices = @transform_5, window_bounds = array<i64: 8, 128>}]} {
    %c0_i32 = arith.constant 0 : i32
    %0 = arith.cmpi eq, %arg2, %c0_i32 : i32
    %1 = arith.extui %0 : i1 to i32
    %c0_i32_0 = arith.constant 0 : i32
    %2 = arith.cmpi ne, %1, %c0_i32_0 : i32
    scf.if %2 {
      %cst_19 = arith.constant 0.000000e+00 : f32
      %23 = vector.broadcast %cst_19 : f32 to vector<8x128xf32>
      %c0_20 = arith.constant 0 : index
      %c0_21 = arith.constant 0 : index
      %24 = vector.load %arg9[%c0_20, %c0_21] : memref<8x128xf32, #tpu.memory_space<vmem>>, vector<8x128xf32>
      tpu.vector_store %arg9[%c0_20, %c0_21], %23 {strides = array<i32>} : memref<8x128xf32, #tpu.memory_space<vmem>>, vector<8x128xf32>,
      %cst_22 = arith.constant 0.000000e+00 : f32
      %25 = vector.broadcast %cst_22 : f32 to vector<8x128xf32>
      %c0_23 = arith.constant 0 : index
      %c0_24 = arith.constant 0 : index
      %26 = vector.load %arg10[%c0_23, %c0_24] : memref<8x128xf32, #tpu.memory_space<vmem>>, vector<8x128xf32>
      tpu.vector_store %arg10[%c0_23, %c0_24], %25 {strides = array<i32>} : memref<8x128xf32, #tpu.memory_space<vmem>>, vector<8x128xf32>,
    } else {
    }
    %c0 = arith.constant 0 : index
    %c0_1 = arith.constant 0 : index
    %3 = vector.load %arg3[%c0, %c0_1] : memref<8x128xf32, #tpu.memory_space<vmem>>, vector<8x128xf32>
    %c0_2 = arith.constant 0 : index
    %c0_3 = arith.constant 0 : index
    %4 = vector.load %arg9[%c0_2, %c0_3] : memref<8x128xf32, #tpu.memory_space<vmem>>, vector<8x128xf32>
    %c0_4 = arith.constant 0 : index
    %c0_5 = arith.constant 0 : index
    %5 = vector.load %arg4[%c0_4, %c0_5] : memref<128x128xf32, #tpu.memory_space<vmem>>, vector<128x128xf32>
    %cst = arith.constant dense<0.000000e+00> : vector<8x128xf32>
    %6 = tpu.matmul %3, %5, %cst {dimension_numbers = #tpu.dot_dimension_numbers<[1], [0], [0], [1], [0, 0, 1, 1], [], []>} : vector<8x128xf32>, vector<128x128xf32>, vector<8x128xf32> -> vector<8x128xf32>
    %7 = arith.addf %4, %6 : vector<8x128xf32>
    %c0_6 = arith.constant 0 : index
    %c0_7 = arith.constant 0 : index
    %8 = vector.load %arg9[%c0_6, %c0_7] : memref<8x128xf32, #tpu.memory_space<vmem>>, vector<8x128xf32>
    tpu.vector_store %arg9[%c0_6, %c0_7], %7 {strides = array<i32>} : memref<8x128xf32, #tpu.memory_space<vmem>>, vector<8x128xf32>,
    %c0_8 = arith.constant 0 : index
    %c0_9 = arith.constant 0 : index
    %9 = vector.load %arg5[%c0_8, %c0_9] : memref<128x128xf32, #tpu.memory_space<vmem>>, vector<128x128xf32>
    %cst_10 = arith.constant -1.100000e+01 : f32
    %cst_11 = arith.constant 1.100000e+01 : f32
    %10 = vector.broadcast %cst_10 : f32 to vector<128x128xf32>
    %11 = arith.maximumf %10, %9 : vector<128x128xf32>
    %12 = vector.broadcast %cst_11 : f32 to vector<128x128xf32>
    %13 = arith.minimumf %12, %11 : vector<128x128xf32>
    %14 = math.exp %13 : vector<128x128xf32>
    %c0_12 = arith.constant 0 : index
    %c0_13 = arith.constant 0 : index
    %15 = vector.load %arg10[%c0_12, %c0_13] : memref<8x128xf32, #tpu.memory_space<vmem>>, vector<8x128xf32>
    %16 = arith.mulf %3, %3 : vector<8x128xf32>
    %cst_14 = arith.constant dense<0.000000e+00> : vector<8x128xf32>
    %17 = tpu.matmul %16, %14, %cst_14 {dimension_numbers = #tpu.dot_dimension_numbers<[1], [0], [0], [1], [0, 0, 1, 1], [], []>} : vector<8x128xf32>, vector<128x128xf32>, vector<8x128xf32> -> vector<8x128xf32>
    %18 = arith.addf %15, %17 : vector<8x128xf32>
    %c0_15 = arith.constant 0 : index
    %c0_16 = arith.constant 0 : index
    %19 = vector.load %arg10[%c0_15, %c0_16] : memref<8x128xf32, #tpu.memory_space<vmem>>, vector<8x128xf32>
    tpu.vector_store %arg10[%c0_15, %c0_16], %18 {strides = array<i32>} : memref<8x128xf32, #tpu.memory_space<vmem>>, vector<8x128xf32>,
    %c0_i32_17 = arith.constant 0 : i32
    %20 = arith.cmpi eq, %arg2, %c0_i32_17 : i32
    %21 = arith.extui %20 : i1 to i32
    %c0_i32_18 = arith.constant 0 : i32
    %22 = arith.cmpi ne, %21, %c0_i32_18 : i32
    scf.if %22 {
      %c0_19 = arith.constant 0 : index
      %c0_20 = arith.constant 0 : index
      %23 = vector.load %arg9[%c0_19, %c0_20] : memref<8x128xf32, #tpu.memory_space<vmem>>, vector<8x128xf32>
      %c0_21 = arith.constant 0 : index
      %c0_22 = arith.constant 0 : index
      %24 = vector.load %arg6[%c0_21, %c0_22] : memref<1x128xf32, #tpu.memory_space<vmem>>, vector<1x128xf32>
      %25 = vector.broadcast %24 : vector<1x128xf32> to vector<8x128xf32>
      %26 = arith.addf %23, %25 : vector<8x128xf32>
      %c0_23 = arith.constant 0 : index
      %c0_24 = arith.constant 0 : index
      %27 = vector.load %arg10[%c0_23, %c0_24] : memref<8x128xf32, #tpu.memory_space<vmem>>, vector<8x128xf32>
      %cst_25 = arith.constant 9.99999993E-9 : f32
      %28 = vector.broadcast %cst_25 : f32 to vector<8x128xf32>
      %29 = arith.addf %27, %28 : vector<8x128xf32>
      %30 = math.sqrt %29 : vector<8x128xf32>
      %c0_26 = arith.constant 0 : index
      %c0_27 = arith.constant 0 : index
      %31 = vector.load %arg7[%c0_26, %c0_27] : memref<8x128xf32, #tpu.memory_space<vmem>>, vector<8x128xf32>
      %32 = arith.mulf %30, %31 : vector<8x128xf32>
      %33 = arith.addf %26, %32 : vector<8x128xf32>
      %c0_28 = arith.constant 0 : index
      %c0_29 = arith.constant 0 : index
      %34 = vector.load %arg8[%c0_28, %c0_29] : memref<8x128xf32, #tpu.memory_space<vmem>>, vector<8x128xf32>
      tpu.vector_store %arg8[%c0_28, %c0_29], %33 {strides = array<i32>} : memref<8x128xf32, #tpu.memory_space<vmem>>, vector<8x128xf32>,
    } else {
    }
    return
  }
  func.func @transform_0(%arg0: i32, %arg1: i32, %arg2: i32) -> (i32, i32) {
    %c0_i32 = arith.constant 0 : i32
    return %arg0, %arg2 : i32, i32
  }
  func.func @transform_1(%arg0: i32, %arg1: i32, %arg2: i32) -> (i32, i32) {
    %c0_i32 = arith.constant 0 : i32
    return %arg2, %arg1 : i32, i32
  }
  func.func @transform_2(%arg0: i32, %arg1: i32, %arg2: i32) -> (i32, i32) {
    %c0_i32 = arith.constant 0 : i32
    return %arg2, %arg1 : i32, i32
  }
  func.func @transform_3(%arg0: i32, %arg1: i32, %arg2: i32) -> (i32, i32) {
    %c0_i32 = arith.constant 0 : i32
    %c0_i32_0 = arith.constant 0 : i32
    return %c0_i32, %arg1 : i32, i32
  }
  func.func @transform_4(%arg0: i32, %arg1: i32, %arg2: i32) -> (i32, i32) {
    %c0_i32 = arith.constant 0 : i32
    return %arg0, %arg1 : i32, i32
  }
  func.func @transform_5(%arg0: i32, %arg1: i32, %arg2: i32) -> (i32, i32) {
    %c0_i32 = arith.constant 0 : i32
    return %arg0, %arg1 : i32, i32
  }
}

</mosaic_0001>

<bundles_post_ra>
// kernel: tpu_custom_call.1
= control target key start
LH: loop header
LB: loop body
LE: loop exit
PB: predicated region body
PF: predicated region fallthrough
CT: control target
= control target key end

     0   :  { %10 = vsyncpa [#allocation5], 0  ;;  %s772_s0 = inlined_call_operand.hbm [shape: f32[8,128], index: 0, kind: input, shape index: {}]   ;;  %s773_s1 = inlined_call_operand.hbm [shape: f32[128,128], index: 1, kind: input, shape index: {}]   ;;  %s774_s2 = inlined_call_operand.hbm [shape: f32[128,128], index: 2, kind: input, shape index: {}]   ;;  %s775_s3 = inlined_call_operand.vmem [shape: f32[1,128], index: 3, kind: input, shape index: {}]   ;;  %s776_s4 = inlined_call_operand.vmem [shape: f32[8,128], index: 4, kind: input, shape index: {}]   ;;  %s777_s5 = inlined_call_operand.hbm [shape: f32[8,128], index: 5, kind: output, shape index: {}]  }
   0x1   :  { %11 = vsyncpa [#allocation8], 0 }
   0x2   :  { %12 = vsyncpa [#allocation6], 0  ;;  %s657_s18 = smov [#allocation7]   ;;  %s563_s22 = scalar_lea.hbm %s773_s1, 2048 }
   0x3   :  { %s28_s19 = sshll.u32 %s657_s18, 4  ;;  %p564_p0 = scmp.ne.s32.totalorder %s773_s1, %s563_s22  ;;  %s29_s19 = int_to_ptr.vmem [resolvable:$true] %s28_s19 }
   0x4   :  { %p567_p1 = scmp.lt.u32.totalorder %s563_s22, %s773_s1 }
   0x6   :  { %p569_p2 = pnand %p567_p1, %p564_p0 }
   0x8   :  { %572 = shalt.err (!%p569_p2)
}
   0x9   :  { %s573_s27 = scalar_lea.vmem %s29_s19, 2048  ;;  %p578_p4 = scmp.lt.s32.totalorder %s29_s19, %s29_s19 }
   0xa   :  { %p574_p3 = scmp.ne.s32.totalorder %s29_s19, %s573_s27  ;;  %p579_p5 = scmp.lt.s32.totalorder %s573_s27, %s573_s27 }
   0xc   :  { %p580_p6 = por %p579_p5, %p578_p4 }
   0xe   :  { %p581_p7 = pnand %p580_p6, %p574_p3 }
  0x10   :  { %584 = shalt.err (!%p581_p7)
}
  0x11   :  { %s658_s28 = smov 128   ;;  %s659_s29 = smov 8  }
  0x12   :  { %34 = dma.hbm_to_vmem [thread:$0]  %s773_s1, 2048, %s29_s19, [#allocation8], %s658_s28, %s658_s28, %s659_s29  }
  0x13   :  { %s660_s7 = smov [#allocation4]   ;;  %s661_s9 = smov [#allocation9]  }
  0x14   :  { %s19_s8 = sshll.u32 %s660_s7, 4  ;;  %s40_s10 = sshll.u32 %s661_s9, 4  ;;  %s20_s8 = int_to_ptr.vmem [resolvable:$true] %s19_s8  ;;  %s41_s10 = int_to_ptr.vmem [resolvable:$true] %s40_s10 }
  0x15   :  { %s585_s13 = scalar_lea.hbm %s772_s0, 128 }
  0x16   :  { %p586_p8 = scmp.ne.s32.totalorder %s772_s0, %s585_s13  ;;  %p589_p9 = scmp.lt.u32.totalorder %s585_s13, %s772_s0 }
  0x18   :  { %p591_p10 = pnand %p589_p9, %p586_p8 }
  0x1a   :  { %594 = shalt.err (!%p591_p10)
}
  0x1b   :  { %s595_s1 = scalar_lea.vmem %s20_s8, 128  ;;  %p600_p12 = scmp.lt.s32.totalorder %s20_s8, %s20_s8 }
  0x1c   :  { %p596_p11 = scmp.ne.s32.totalorder %s20_s8, %s595_s1  ;;  %p601_p13 = scmp.lt.s32.totalorder %s595_s1, %s595_s1 }
  0x1e   :  { %p602_p0 = por %p601_p13, %p600_p12 }
  0x20   :  { %p603_p1 = pnand %p602_p0, %p596_p11 }
  0x22   :  { %606 = shalt.err (!%p603_p1)
}
  0x23   :  { %22 = dma.hbm_to_vmem [thread:$0]  %s772_s0, 128, %s20_s8, [#allocation5]  }
  0x24   :  { %s607_s22 = scalar_lea.hbm %s774_s2, 2048 }
  0x25   :  { %p608_p2 = scmp.ne.s32.totalorder %s774_s2, %s607_s22  ;;  %p611_p3 = scmp.lt.u32.totalorder %s607_s22, %s774_s2 }
  0x27   :  { %p613_p4 = pnand %p611_p3, %p608_p2 }
  0x29   :  { %616 = shalt.err (!%p613_p4)
}
  0x2a   :  { %s617_s27 = scalar_lea.vmem %s41_s10, 2048  ;;  %p622_p6 = scmp.lt.s32.totalorder %s41_s10, %s41_s10 }
  0x2b   :  { %p618_p5 = scmp.ne.s32.totalorder %s41_s10, %s617_s27  ;;  %p623_p7 = scmp.lt.s32.totalorder %s617_s27, %s617_s27 }
  0x2d   :  { %p624_p8 = por %p623_p7, %p622_p6 }
  0x2f   :  { %p625_p9 = pnand %p624_p8, %p618_p5 }
  0x31   :  { %628 = shalt.err (!%p625_p9)
}
  0x32   :  { %46 = dma.hbm_to_vmem [thread:$0]  %s774_s2, 2048, %s41_s10, [#allocation8], %s658_s28, %s658_s28, %s659_s29  }
  0x33   :  { %651 = dma.done.wait [#allocation5], 128  }
  0x34   :  { %652 = vsyncadd [#allocation5], 4294967168 }
  0x35   :  { %653 = dma.done.wait [#allocation8], 4096  }
  0x36   :  { %654 = vsyncadd [#allocation8], 4294963200  ;;  %v662_v0 = vmov 0.0|0.0   ;;  %vm663_vm0 = vmmov 0   ;;  %v664_v1 = vmov 0.0   ;;  %v156_v2 = vld [vmem:[#allocation9] sm:$0xff] }
  0x37   :  { %496 = vmatprep.subr.bf16.mxu1 %v662_v0  ;;  %472 = vmatprep.subr.bf16.mxu0 %v662_v0  ;;  %v157_v3 = vld [vmem:[#allocation9 + $0x8] sm:$0xff]  ;;  %v158_v4 = vld [vmem:[#allocation9 + $0x10] sm:$0xff]  ;;  %v351_v5 = vclamps-f32 %v156_v2, 11.0  ;;  %v159_v7 = vld [vmem:[#allocation9 + $0x18] sm:$0xff]  ;;  %s665_s7 = smov [#allocation10]  }
  0x38   :  { %469 = vmatprep.mubr.msk.f32.mxu1 %vm663_vm0, %v664_v1  ;;  %434 = vmatprep.mubr.msk.f32.mxu0 %vm663_vm0, %v664_v1  ;;  %v352_v6 = vclamps-f32 %v157_v3, 11.0  ;;  %v353_v8 = vclamps-f32 %v158_v4, 11.0  ;;  %v160_v9 = vld [vmem:[#allocation9 + $0x20] sm:$0xff]  ;;  %v161_v10 = vld [vmem:[#allocation9 + $0x28] sm:$0xff]  ;;  %v354_v11 = vclamps-f32 %v159_v7, 11.0  ;;  %v162_v14 = vld [vmem:[#allocation9 + $0x30] sm:$0xff] }
  0x39   :  { %v355_v12 = vclamps-f32 %v160_v9, 11.0  ;;  %v356_v13 = vclamps-f32 %v161_v10, 11.0  ;;  %v163_v15 = vld [vmem:[#allocation9 + $0x38] sm:$0xff]  ;;  %v68_v16 = vld [vmem:[#allocation7] sm:$0xff]  ;;  %v204_v17 = vmul.f32 1.442695, %v351_v5 }
  0x3a   :  { %v206_v18 = vmul.f32 1.442695, %v352_v6  ;;  %v208_v19 = vmul.f32 1.442695, %v353_v8  ;;  %v210_v20 = vmul.f32 1.442695, %v354_v11 }
  0x3b   :  { %529 = vpow2.f32 %v204_v17  ;;  %v212_v21 = vmul.f32 1.442695, %v355_v12  ;;  %v357_v22 = vclamps-f32 %v162_v14, 11.0  ;;  %v69_v23 = vld [vmem:[#allocation7 + $0x8] sm:$0xff]  ;;  %v214_v24 = vmul.f32 1.442695, %v356_v13 }
  0x3c   :  { %531 = vpow2.f32 %v206_v18  ;;  %v358_v25 = vclamps-f32 %v163_v15, 11.0  ;;  %v473_v26 = vpack.c.bf16 %v69_v23, %v68_v16  ;;  %v164_v27 = vld [vmem:[#allocation9 + $0x40] sm:$0xff]  ;;  %v70_v28 = vld [vmem:[#allocation7 + $0x10] sm:$0xff]  ;;  %v71_v29 = vld [vmem:[#allocation7 + $0x18] sm:$0xff]  ;;  %s341_s8 = sshll.u32 %s665_s7, 4  ;;  %s342_s8 = int_to_ptr.vmem [resolvable:$true] %s341_s8 }
  0x3d   :  { %533 = vpow2.f32 %v208_v19  ;;  %v165_v30 = vld [vmem:[#allocation9 + $0x48] sm:$0xff]  ;;  %v476_v31 = vpack.c.bf16 %v71_v29, %v70_v28  ;;  %v216_v32 = vmul.f32 1.442695, %v357_v22  ;;  %v359_v33 = vclamps-f32 %v164_v27, 11.0  ;;  %v72_v34 = vld [vmem:[#allocation7 + $0x20] sm:$0xff]  ;;  %v166_v38 = vld [vmem:[#allocation9 + $0x50] sm:$0xff]  ;;  %p634_p11 = scmp.lt.s32.totalorder %s342_s8, %s342_s8 }
  0x3e   :  { %535 = vpow2.f32 %v210_v20  ;;  %474 = vmatpush3.bf16.msra.mxu0 %v473_v26  ;;  %v73_v35 = vld [vmem:[#allocation7 + $0x28] sm:$0xff]  ;;  %v218_v36 = vmul.f32 1.442695, %v358_v25  ;;  %v360_v37 = vclamps-f32 %v165_v30, 11.0  ;;  %v167_v39 = vld [vmem:[#allocation9 + $0x58] sm:$0xff]  ;;  %v361_v42 = vclamps-f32 %v166_v38, 11.0 }
  0x3f   :  { %537 = vpow2.f32 %v212_v21  ;;  %475 = vmatprep.subr.bf16.mxu0 %v662_v0  ;;  %v479_v40 = vpack.c.bf16 %v73_v35, %v72_v34  ;;  %v220_v41 = vmul.f32 1.442695, %v359_v33  ;;  %v74_v43 = vld [vmem:[#allocation7 + $0x30] sm:$0xff]  ;;  %v75_v44 = vld [vmem:[#allocation7 + $0x38] sm:$0xff]  ;;  %v362_v46 = vclamps-f32 %v167_v39, 11.0  ;;  %v168_v47 = vld [vmem:[#allocation9 + $0x60] sm:$0xff] }
  0x40   :  { %539 = vpow2.f32 %v214_v24  ;;  %v222_v45 = vmul.f32 1.442695, %v360_v37  ;;  %v169_v49 = vld [vmem:[#allocation9 + $0x68] sm:$0xff]  ;;  %v482_v51 = vpack.c.bf16 %v75_v44, %v74_v43  ;;  %v224_v54 = vmul.f32 1.442695, %v361_v42  ;;  %v76_v56 = vld [vmem:[#allocation7 + $0x40] sm:$0xff] }
  0x41   :  { %541 = vpow2.f32 %v216_v32  ;;  %v363_v55 = vclamps-f32 %v168_v47, 11.0  ;;  %v77_v57 = vld [vmem:[#allocation7 + $0x48] sm:$0xff]  ;;  %v226_v59 = vmul.f32 1.442695, %v362_v46  ;;  %v364_v60 = vclamps-f32 %v169_v49, 11.0  ;;  %v170_v61 = vld [vmem:[#allocation9 + $0x70] sm:$0xff] }
  0x42   :  { %477 = vmatpush3.bf16.msra.mxu0 %v476_v31  ;;  %543 = vpow2.f32 %v218_v36  ;;  %v171_v1 = vld [vmem:[#allocation9 + $0x78] sm:$0xff]  ;;  %v485_v3 = vpack.c.bf16 %v77_v57, %v76_v56  ;;  %v365_v5 = vclamps-f32 %v170_v61, 11.0  ;;  %v78_v6 = vld [vmem:[#allocation7 + $0x50] sm:$0xff]  ;;  %v80_v15 = vld [vmem:[#allocation7 + $0x60] sm:$0xff]  ;;  %s629_s9 = scalar_lea.vmem %s342_s8, 128 }
  0x43   :  { %478 = vmatprep.subr.bf16.mxu0 %v662_v0  ;;  %545 = vpow2.f32 %v220_v41  ;;  %v228_v4 = vmul.f32 1.442695, %v363_v55  ;;  %v79_v7 = vld [vmem:[#allocation7 + $0x58] sm:$0xff]  ;;  %v230_v8 = vmul.f32 1.442695, %v364_v60  ;;  %v366_v9 = vclamps-f32 %v171_v1, 11.0  ;;  %p630_p10 = scmp.ne.s32.totalorder %s342_s8, %s629_s9  ;;  %p635_p12 = scmp.lt.s32.totalorder %s629_s9, %s629_s9 }
  0x44   :  { %547 = vpow2.f32 %v222_v45  ;;  %v488_v13 = vpack.c.bf16 %v79_v7, %v78_v6  ;;  %v232_v14 = vmul.f32 1.442695, %v365_v5  ;;  %v81_v16 = vld [vmem:[#allocation7 + $0x68] sm:$0xff]  ;;  %v82_v22 = vld [vmem:[#allocation7 + $0x70] sm:$0xff]  ;;  %v83_v23 = vld [vmem:[#allocation7 + $0x78] sm:$0xff] }
  0x45   :  { %v530_v48 = vpop.eup %529  ;;  %549 = vpow2.f32 %v224_v54  ;;  %v234_v17 = vmul.f32 1.442695, %v366_v9  ;;  %v491_v21 = vpack.c.bf16 %v81_v16, %v80_v15  ;;  %v494_v27 = vpack.c.bf16 %v83_v23, %v82_v22  ;;  %v66_v31 = vld [vmem:[#allocation4] sm:$0xff]  ;;  %p636_p13 = por %p635_p12, %p634_p11 }
  0x46   :  { %v532_v50 = vpop.eup %531  ;;  %480 = vmatpush3.bf16.msra.mxu0 %v479_v40  ;;  %551 = vpow2.f32 %v226_v59  ;;  %v237_v36 = vmul.f32 %v66_v31, %v66_v31  ;;  %v367_v43 = vld [vmem:[%s775_s3] ss:$0 sm:$0xff] }
  0x47   :  { %v534_v52 = vpop.eup %533  ;;  %v497_v53 = vpack.c.bf16 %v532_v50, %v530_v48  ;;  %481 = vmatprep.subr.bf16.mxu0 %v662_v0  ;;  %553 = vpow2.f32 %v228_v4  ;;  %p637_p0 = pnand %p636_p13, %p630_p10 }
  0x48   :  { %v536_v58 = vpop.eup %535  ;;  %555 = vpow2.f32 %v230_v8 }
  0x49   :  { %v538_v62 = vpop.eup %537  ;;  %498 = vmatpush3.bf16.msra.mxu1 %v497_v53  ;;  %v500_v63 = vpack.c.bf16 %v536_v58, %v534_v52  ;;  %557 = vpow2.f32 %v232_v14 }
  0x4a   :  { %v540_v2 = vpop.eup %539  ;;  %499 = vmatprep.subr.bf16.mxu1 %v662_v0  ;;  %483 = vmatpush3.bf16.msra.mxu0 %v482_v51  ;;  %559 = vpow2.f32 %v234_v17 }
  0x4b   :  { %484 = vmatprep.subr.bf16.mxu0 %v662_v0  ;;  %v542_v10 = vpop.eup %541  ;;  %v503_v11 = vpack.c.bf16 %v540_v2, %v538_v62 }
  0x4c   :  { %v544_v12 = vpop.eup %543 }
  0x4d   :  { %501 = vmatpush3.bf16.msra.mxu1 %v500_v63  ;;  %v546_v18 = vpop.eup %545  ;;  %v506_v19 = vpack.c.bf16 %v544_v12, %v542_v10 }
  0x4e   :  { %502 = vmatprep.subr.bf16.mxu1 %v662_v0  ;;  %486 = vmatpush3.bf16.msra.mxu0 %v485_v3  ;;  %v548_v20 = vpop.eup %547 }
  0x4f   :  { %487 = vmatprep.subr.bf16.mxu0 %v662_v0  ;;  %v550_v24 = vpop.eup %549  ;;  %v509_v25 = vpack.c.bf16 %v548_v20, %v546_v18 }
  0x50   :  { %v552_v26 = vpop.eup %551 }
  0x51   :  { %504 = vmatpush3.bf16.msra.mxu1 %v503_v11  ;;  %v554_v28 = vpop.eup %553  ;;  %v512_v29 = vpack.c.bf16 %v552_v26, %v550_v24 }
  0x52   :  { %505 = vmatprep.subr.bf16.mxu1 %v662_v0  ;;  %489 = vmatpush3.bf16.msra.mxu0 %v488_v13  ;;  %v556_v30 = vpop.eup %555 }
  0x53   :  { %490 = vmatprep.subr.bf16.mxu0 %v662_v0  ;;  %v558_v32 = vpop.eup %557  ;;  %v515_v33 = vpack.c.bf16 %v556_v30, %v554_v28 }
  0x54   :  { %v560_v34 = vpop.eup %559 }
  0x55   :  { %507 = vmatpush3.bf16.msra.mxu1 %v506_v19  ;;  %v518_v35 = vpack.c.bf16 %v560_v34, %v558_v32 }
  0x56   :  { %508 = vmatprep.subr.bf16.mxu1 %v662_v0  ;;  %492 = vmatpush3.bf16.msra.mxu0 %v491_v21 }
  0x57   :  { %493 = vmatprep.subr.bf16.mxu0 %v662_v0 }
  0x59   :  { %510 = vmatpush3.bf16.msra.mxu1 %v509_v25 }
  0x5a   :  { %511 = vmatprep.subr.bf16.mxu1 %v662_v0  ;;  %495 = vmatpush3.bf16.msra.mxu0 %v494_v27 }
  0x5d   :  { %513 = vmatpush3.bf16.msra.mxu1 %v512_v29  ;;  %435 = vmatmul.mubr.f32.vlgmr.msra.gmra.mrb[0].mxu0 %v66_v31 }
  0x5e   :  { %514 = vmatprep.subr.bf16.mxu1 %v662_v0 }
  0x61   :  { %516 = vmatpush3.bf16.msra.mxu1 %v515_v33 }
  0x62   :  { %517 = vmatprep.subr.bf16.mxu1 %v662_v0  ;;  %v331_v0 = vld [vmem:[%s776_s4] sm:$0xff] }
  0x65   :  { %519 = vmatpush3.bf16.msra.mxu1 %v518_v35 }
  0x68   :  { %470 = vmatmul.mubr.f32.vlgmr.msra.gmra.mrb[0].mxu1 %v237_v36 }
 0x130   :  { %v150_v37 = vpop.f32.mrb[0].mxu0 }
 0x131   :  { %v436_v38 = vpop.f32.mrb[1].mxu0  ;;  %v321_v46 = vadd.f32 %v367_v43, %v150_v37 }
 0x13b   :  { %v304_v39 = vpop.f32.mrb[0].mxu1 }
 0x13c   :  { %v323_v40 = vadd.f32 1e-08, %v304_v39  ;;  %v471_v41 = vpop.f32.mrb[1].mxu1 }
 0x13e   :  { %561 = vrsqrt.f32 %v323_v40  ;;  %vm326_vm1 = vcmp.eq.f32.partialorder %v323_v40, inf  ;;  %v329_v45 = vand.u32 2147483648, %v323_v40  ;;  %vm328_vm2 = vcmp.eq.f32.partialorder %v323_v40, 0.0 }
 0x148   :  { %v562_v42 = vpop.eup %561 }
 0x149   :  { %v325_v44 = vmul.f32 %v562_v42, %v323_v40 }
 0x14b   :  { %v327_v47 = vsel %vm326_vm1, %v323_v40, %v325_v44 }
 0x14c   :  { %v330_v48 = vsel %vm328_vm2, %v329_v45, %v327_v47 }
 0x14d   :  { %v332_v49 = vmul.f32 %v331_v0, %v330_v48 }
 0x14f   :  { %v333_v50 = vadd.f32 %v332_v49, %v321_v46 }
 0x151   :  { %334 = vst [vmem:[#allocation10] sm:$0xff] %v333_v50 }
 0x152   :  { %640 = shalt.err (!%p637_p0)
}
 0x153   :  { %s641_s4 = scalar_lea.hbm %s777_s5, 128 }
 0x154   :  { %p642_p1 = scmp.ne.s32.totalorder %s777_s5, %s641_s4  ;;  %p645_p2 = scmp.lt.u32.totalorder %s641_s4, %s777_s5 }
 0x156   :  { %p647_p3 = pnand %p645_p2, %p642_p1 }
 0x158   :  { %650 = shalt.err (!%p647_p3)
}
 0x159   :  { %344 = dma.vmem_to_hbm [thread:$0]  %s342_s8, 128, %s777_s5, [#allocation6]  }
 0x15a   :  { %655 = dma.done.wait [#allocation6], 128  }
 0x15b   :  { %656 = vsyncadd [#allocation6], 4294967168 }
 0x15c   :  { %348 = vsyncpa [#allocation5], 1 }
 0x15d   :  { %349 = vsyncpa [#allocation8], 1 }
 0x15e   :  { %350 = vsyncpa [#allocation6], 1 }

</bundles_post_ra>
